<compile_context>
chip_gen: v7x
topology: tpu7x:2x2x1
jax: 0.10.0
libtpu: 0.0.40
codegen_flags: <defaults>
</compile_context>

<pallas_src>
import functools

import jax
import jax.numpy as jnp
from jax import lax
from jax.experimental import pallas as pl
from jax.experimental.pallas import tpu as pltpu


def _info_nce_kernel(x_ref, out_ref, *, inv_temp):
    # x_ref:   (Bb, 2, P, D) views 0/1 of Bb batches, ORIGINAL dtype (no pre-cast)
    # out_ref: (1, 1) f32 partial sum of (lse - positive) over this batch block
    x = x_ref[...]
    f1 = x[:, 0]                      # (Bb, P, D) native dtype, view 0
    f2 = x[:, 1]                      # (Bb, P, D) native dtype, view 1

    # s[v, j, i] = <f1[v, i], f2[v, j]> / T == score[v, i, j]; computed transposed so
    # the class-axis (i) logsumexp reduces over the lane axis.  Native-dtype operands,
    # f32 MXU accumulation.
    s = lax.dot_general(
        f2, f1,
        dimension_numbers=(((2,), (2,)), ((0,), (0,))),
        preferred_element_type=jnp.float32,
    ) * inv_temp                                                        # (Bb, P, P) f32

    m = jnp.max(s, axis=-1, keepdims=True)                              # (Bb, P, 1)
    lse = m + jnp.log(jnp.sum(jnp.exp(s - m), axis=-1, keepdims=True))  # (Bb, P, 1)

    # positive logit score[v, j, j] = <f1[v, j], f2[v, j]> / T: elementwise row-dot,
    # native-dtype multiply, f32 accumulate (no diagonal extraction from the PxP mat).
    pos = jnp.sum((f1 * f2).astype(jnp.float32), axis=-1, keepdims=True) * inv_temp

    out_ref[...] = jnp.sum(lse - pos).reshape(1, 1)


def _pick_batch_block(B, P, D, itemsize):
    """Largest divisor of B whose block fits a conservative DMA / VMEM budget."""
    per_batch_in = 2 * P * D * itemsize                 # bytes DMA'd per batch (2 views)
    per_batch_tmp = 3 * P * P * 4 + 4 * P * 4           # rough f32 s/exp/lse temporaries
    dma_target = 4 << 20                                # ~2-8 MB per-step DMA sweet spot
    vmem_budget = 40 << 20                              # conservative for v7x (64 MiB phys)
    cap = min(
        max(1, dma_target // per_batch_in),
        max(1, vmem_budget // (2 * per_batch_in + per_batch_tmp)),
        B,
        64,
    )
    for bb in range(int(cap), 0, -1):
        if B % bb == 0:
            return bb
    return 1


def info_nce_loss_patch_level(cl_features, temperature=0.1, contrast_sample="all"):
    """Pallas TPU forward of InfoNCELossPatchLevel (default 'all' contrast path)."""
    if cl_features.ndim < 4:
        raise ValueError(
            "`features` needs to be [bsz, n_views, n_cl_patches, ...],"
            "at least 4 dimensions are required"
        )
    if cl_features.ndim > 4:
        cl_features = cl_features.reshape(
            cl_features.shape[0], cl_features.shape[1], cl_features.shape[2], -1
        )
    if contrast_sample != "all":
        # TODO(synk): 'positive' (eye-masked logits) and 'region' (parsing-map pooled
        # region features) branches are not implemented in the Pallas path.
        raise NotImplementedError("Only contrast_sample='all' is implemented.")

    B, V, P, D = cl_features.shape
    if V < 2:
        raise ValueError("need at least 2 views")
    # TODO(synk): for best MXU/DMA efficiency keep D a multiple of 128 at the caller
    # (pad/pack the feature dim in the producer); the kernel is correct for any D.

    inv_temp = float(1.0 / temperature)
    final_scale = float(2.0 * temperature / (B * P))   # global denominator B*P

    bb = _pick_batch_block(B, P, D, cl_features.dtype.itemsize)
    grid = B // bb

    kernel = functools.partial(_info_nce_kernel, inv_temp=inv_temp)

    partials = pl.pallas_call(
        kernel,
        out_shape=jax.ShapeDtypeStruct((grid, 1, 1), jnp.float32),
        grid_spec=pltpu.PrefetchScalarGridSpec(
            num_scalar_prefetch=0,
            grid=(grid,),
            in_specs=[
                # One batch-block per grid step: Bb batches, views 0..1, all patches
                # and feature dims, in the ORIGINAL dtype (cast handled in-kernel).
                pl.BlockSpec((bb, 2, P, D), lambda g: (g, 0, 0, 0)),
            ],
            # Per-block partial sums: distinct output block per grid step, so the grid
            # axis is truly parallel (v7x megacore-friendly, no shared accumulator).
            out_specs=pl.BlockSpec((None, 1, 1), lambda g: (g, 0, 0)),
        ),
        compiler_params=pltpu.CompilerParams(
            dimension_semantics=("parallel",),
            vmem_limit_bytes=48 * 1024 * 1024,
        ),
    )(cl_features)

    return jnp.sum(partials) * final_scale


if __name__ == "__main__":
    key = jax.random.PRNGKey(0)
    B, V, P, D = 2, 2, 16, 32
    temperature = 0.1

    x = jax.random.normal(key, (B, V, P, D), dtype=jnp.float32)
    # Example inputs only: unit-norm patch features (typical for InfoNCE);
    # the kernel itself does not assume normalization.
    cl_features = x / jnp.linalg.norm(x, axis=-1, keepdims=True)

    loss = info_nce_loss_patch_level(cl_features, temperature=temperature)
    jax.block_until_ready(loss)

    # Plain-JAX reference mirroring the PyTorch module ('all' path):
    #   nn.CrossEntropyLoss on (N, C, d) => log_softmax over dim 1, target arange(P).
    f1 = cl_features[:, 0].astype(jnp.float32)
    f2 = cl_features[:, 1].astype(jnp.float32)
    score = jnp.einsum("bpd,bqd->bpq", f1, f2) / temperature       # (B, P, P)
    logp = jax.nn.log_softmax(score, axis=1)                       # class dim = 1
    ref = 2.0 * temperature * jnp.mean(-jnp.einsum("bjj->bj", logp))

    assert jnp.allclose(loss, ref, rtol=1e-3, atol=1e-3), (loss, ref)
    print("KERNEL_OK")
</pallas_src>

<mosaic_0001>
module attributes {stable_mosaic.version = 11 : i64} {
  func.func @_info_nce_kernel(%arg0: i32, %arg1: memref<2x2x16x32xf32, #tpu.memory_space<vmem>>, %arg2: memref<1x1x1xf32, #tpu.memory_space<vmem>>) attributes {dimension_semantics = [#tpu.dimension_semantics<parallel>], iteration_bounds = array<i64: 1>, scalar_prefetch = 0 : i64, scratch_operands = 0 : i64, tpu.core_type = #tpu.core_type<tc>, window_params = [{transform_indices = @transform_0, window_bounds = array<i64: 2, 2, 16, 32>}, {transform_indices = @transform_1, window_bounds = array<i64: 1, 1, 1>}]} {
    %c0 = arith.constant 0 : index
    %c0_0 = arith.constant 0 : index
    %c0_1 = arith.constant 0 : index
    %c0_2 = arith.constant 0 : index
    %0 = vector.load %arg1[%c0, %c0_0, %c0_1, %c0_2] : memref<2x2x16x32xf32, #tpu.memory_space<vmem>>, vector<2x2x16x32xf32>
    %1 = vector.extract_strided_slice %0 {offsets = [0, 0, 0, 0], sizes = [2, 1, 16, 32], strides = [1, 1, 1, 1]} : vector<2x2x16x32xf32> to vector<2x1x16x32xf32>
    %2 = vector.shape_cast %1 : vector<2x1x16x32xf32> to vector<2x16x32xf32>
    %3 = vector.extract_strided_slice %0 {offsets = [0, 1, 0, 0], sizes = [2, 1, 16, 32], strides = [1, 1, 1, 1]} : vector<2x2x16x32xf32> to vector<2x1x16x32xf32>
    %4 = vector.shape_cast %3 : vector<2x1x16x32xf32> to vector<2x16x32xf32>
    %cst = arith.constant dense<0.000000e+00> : vector<2x16x16xf32>
    %5 = tpu.matmul %4, %2, %cst {dimension_numbers = #tpu.dot_dimension_numbers<[2], [2], [1], [1], [0, 0, 0, 1, 1, 1], [0], [0]>} : vector<2x16x32xf32>, vector<2x16x32xf32>, vector<2x16x16xf32> -> vector<2x16x16xf32>
    %cst_3 = arith.constant 1.000000e+01 : f32
    %6 = vector.broadcast %cst_3 : f32 to vector<2x16x16xf32>
    %7 = arith.mulf %5, %6 : vector<2x16x16xf32>
    %cst_4 = arith.constant dense<0xFF800000> : vector<2x16xf32>
    %8 = vector.multi_reduction <maximumf>, %7, %cst_4 [2] : vector<2x16x16xf32> to vector<2x16xf32>
    %9 = vector.shape_cast %8 : vector<2x16xf32> to vector<2x16x1xf32>
    %10 = vector.broadcast %9 : vector<2x16x1xf32> to vector<2x16x16xf32>
    %11 = arith.subf %7, %10 : vector<2x16x16xf32>
    %12 = math.exp %11 : vector<2x16x16xf32>
    %cst_5 = arith.constant dense<0.000000e+00> : vector<2x16xf32>
    %13 = vector.multi_reduction <add>, %12, %cst_5 [2] : vector<2x16x16xf32> to vector<2x16xf32>
    %14 = vector.shape_cast %13 : vector<2x16xf32> to vector<2x16x1xf32>
    %15 = math.log %14 : vector<2x16x1xf32>
    %16 = arith.addf %9, %15 : vector<2x16x1xf32>
    %17 = arith.mulf %2, %4 : vector<2x16x32xf32>
    %cst_6 = arith.constant dense<0.000000e+00> : vector<2x16xf32>
    %18 = vector.multi_reduction <add>, %17, %cst_6 [2] : vector<2x16x32xf32> to vector<2x16xf32>
    %19 = vector.shape_cast %18 : vector<2x16xf32> to vector<2x16x1xf32>
    %cst_7 = arith.constant 1.000000e+01 : f32
    %20 = vector.broadcast %cst_7 : f32 to vector<2x16x1xf32>
    %21 = arith.mulf %19, %20 : vector<2x16x1xf32>
    %22 = arith.subf %16, %21 : vector<2x16x1xf32>
    %23 = vector.shape_cast %22 : vector<2x16x1xf32> to vector<1x2x16x1xf32>
    %cst_8 = arith.constant dense<0.000000e+00> : vector<1xf32>
    %24 = vector.multi_reduction <add>, %23, %cst_8 [1, 2, 3] : vector<1x2x16x1xf32> to vector<1xf32>
    %25 = vector.shape_cast %24 : vector<1xf32> to vector<1x1x1x1xf32>
    %26 = vector.extract %25[0, 0, 0, 0] : f32 from vector<1x1x1x1xf32>
    %27 = vector.broadcast %26 : f32 to vector<1x1xf32>
    %c0_9 = arith.constant 0 : index
    %c0_10 = arith.constant 0 : index
    %c0_11 = arith.constant 0 : index
    %28 = vector.load %arg2[%c0_9, %c0_10, %c0_11] : memref<1x1x1xf32, #tpu.memory_space<vmem>>, vector<1x1x1xf32>
    %29 = vector.shape_cast %28 : vector<1x1x1xf32> to vector<1x1xf32>
    %30 = vector.shape_cast %27 : vector<1x1xf32> to vector<1x1x1xf32>
    tpu.vector_store %arg2[%c0_9, %c0_10, %c0_11], %30 {strides = array<i32>} : memref<1x1x1xf32, #tpu.memory_space<vmem>>, vector<1x1x1xf32>,
    return
  }
  func.func @transform_0(%arg0: i32) -> (i32, i32, i32, i32) {
    %c0_i32 = arith.constant 0 : i32
    %c0_i32_0 = arith.constant 0 : i32
    %c0_i32_1 = arith.constant 0 : i32
    %c0_i32_2 = arith.constant 0 : i32
    return %arg0, %c0_i32, %c0_i32_0, %c0_i32_1 : i32, i32, i32, i32
  }
  func.func @transform_1(%arg0: i32) -> (i32, i32, i32) {
    %c0_i32 = arith.constant 0 : i32
    %c0_i32_0 = arith.constant 0 : i32
    %c0_i32_1 = arith.constant 0 : i32
    return %arg0, %c0_i32, %c0_i32_0 : i32, i32, i32
  }
}

</mosaic_0001>

<bundles_post_ra>
// kernel: tpu_custom_call.1
= control target key start
LH: loop header
LB: loop body
LE: loop exit
PB: predicated region body
PF: predicated region fallthrough
CT: control target
= control target key end

     0   :  { %6 = vsyncpa [#allocation3], 0  ;;  %s514_s0 = inlined_call_operand.hbm [shape: f32[2,2,16,32], index: 0, kind: input, shape index: {}]   ;;  %s515_s1 = inlined_call_operand.hbm [shape: f32[1,1,1], index: 1, kind: output, shape index: {}]  }
   0x1   :  { %7 = vsyncpa [#allocation4], 0  ;;  %s430_s6 = smov [#allocation2]   ;;  %s382_s10 = scalar_lea.hbm %s514_s0, 1024 }
   0x2   :  { %s13_s7 = sshll.u32 %s430_s6, 4  ;;  %p383_p0 = scmp.ne.s32.totalorder %s514_s0, %s382_s10  ;;  %s14_s7 = int_to_ptr.vmem [resolvable:$true] %s13_s7 }
   0x3   :  { %p386_p1 = scmp.lt.u32.totalorder %s382_s10, %s514_s0 }
   0x5   :  { %p388_p2 = pnand %p386_p1, %p383_p0 }
   0x7   :  { %391 = shalt.err (!%p388_p2)
}
   0x8   :  { %s392_s15 = scalar_lea.vmem %s14_s7, 1024  ;;  %p397_p4 = scmp.lt.s32.totalorder %s14_s7, %s14_s7 }
   0x9   :  { %p393_p3 = scmp.ne.s32.totalorder %s14_s7, %s392_s15  ;;  %p398_p5 = scmp.lt.s32.totalorder %s392_s15, %s392_s15 }
   0xb   :  { %p399_p6 = por %p398_p5, %p397_p4 }
   0xd   :  { %p400_p7 = pnand %p399_p6, %p393_p3 }
   0xf   :  { %403 = shalt.err (!%p400_p7)
}
  0x10   :  { %s431_s16 = smov 128   ;;  %s432_s17 = smov 8  }
  0x11   :  { %19 = dma.hbm_to_vmem [thread:$0]  %s514_s0, 1024, %s14_s7, [#allocation3], %s431_s16, %s431_s16, %s432_s17  }
  0x12   :  { %426 = dma.done.wait [#allocation3], 1024  }
  0x13   :  { %427 = vsyncadd [#allocation3], 4294966272  ;;  %vm31_vm0 = vcmask 261120   ;;  %v23_v1 = vld [vmem:[#allocation2] sm:$0xff]  ;;  %v462_v2 = vld [vmem:[#allocation2 + $0x8] sm:$0xff]  ;;  %vm210_vm2 = vcmask 130048  }
  0x14   :  { %vm458_vm1 = vmpackc.low %vm31_vm0, %vm31_vm0  ;;  %v27_v3 = vld [vmem:[#allocation2 + $0x20] sm:$0xff]  ;;  %v348_v4 = vpack.c.bf16 %v462_v2, %v23_v1  ;;  %v465_v5 = vld [vmem:[#allocation2 + $0x28] sm:$0xff]  ;;  %vm283_vm3 = vcmask 7168   ;;  %s433_s0 = smov [#allocation5]   ;;  %vm301_vm4 = vcmask 0  }
  0x15   :  { %v25_v6 = vld [vmem:[#allocation2 + $0x10] sm:$0xff]  ;;  %v354_v8 = vpack.c.bf16 %v465_v5, %v27_v3  ;;  %v26_v11 = vld [vmem:[#allocation2 + $0x18] sm:$0xff]  ;;  %s309_s20 = sshll.u32 %s433_s0, 4  ;;  %s310_s20 = int_to_ptr.vmem [resolvable:$true] %s309_s20 }
  0x16   :  { %v29_v7 = vld [vmem:[#allocation2 + $0x30] sm:$0xff]  ;;  %338 = vmatprep.mubr.msk.f32.mxu0 %vm31_vm0, %v25_v6  ;;  %v259_v9 = vmul.f32 %v25_v6, %v23_v1  ;;  %350 = vmatprep.subr.msk.bf16.mxu0 %vm458_vm1, %v348_v4  ;;  %v30_v12 = vld [vmem:[#allocation2 + $0x38] sm:$0xff]  ;;  %v260_v45 = vmul.f32 %v26_v11, %v462_v2  ;;  %s404_s22 = scalar_lea.vmem %s310_s20, 16  ;;  %s408_s23 = scalar_lea.vmem %s310_s20, 32 }
  0x17   :  { %345 = vmatprep.mubr.msk.f32.mxu1 %vm31_vm0, %v29_v7  ;;  %v261_v10 = vmul.f32 %v29_v7, %v27_v3  ;;  %356 = vmatprep.subr.msk.bf16.mxu1 %vm458_vm1, %v354_v8  ;;  %v262_v49 = vmul.f32 %v30_v12, %v465_v5  ;;  %p405_p8 = scmp.ne.s32.totalorder %s310_s20, %s404_s22  ;;  %p409_p9 = scmp.lt.s32.totalorder %s310_s20, %s310_s20 }
  0x18   :  { %353 = vmatpush3.bf16.xpose.msk.msra.mxu0 %vm458_vm1, %v348_v4  ;;  %359 = vmatpush3.bf16.xpose.msk.msra.mxu1 %vm458_vm1, %v354_v8  ;;  %v263_v44 = vsel %vm31_vm0, %v259_v9, 0.0  ;;  %v266_v48 = vsel %vm31_vm0, %v260_v45, 0.0  ;;  %p410_p10 = scmp.lt.s32.totalorder %s408_s23, %s404_s22 }
  0x19   :  { %v269_v47 = vsel %vm31_vm0, %v261_v10, 0.0  ;;  %v272_v50 = vsel %vm31_vm0, %v262_v49, 0.0 }
  0x1a   :  { %p411_p11 = por %p410_p10, %p409_p9 }
  0x1c   :  { %p412_p12 = pnand %p411_p11, %p405_p8 }
  0x1f   :  { %339 = vmatmul.mubr.msk.f32.vlgmr.msra.gmra.mrb[0].mxu0 %vm31_vm0, %v26_v11  ;;  %346 = vmatmul.mubr.msk.f32.vlgmr.msra.gmra.mrb[0].mxu1 %vm31_vm0, %v30_v12 }
  0xf2   :  { %v340_v13 = vpop.f32.mrb[0].mxu0  ;;  %v347_v14 = vpop.f32.mrb[0].mxu1 }
  0xf3   :  { %v110_v15 = vpop.f32.mrb[1].mxu0  ;;  %v197_v17 = vpop.f32.mrb[1].mxu1  ;;  %v209_v18 = vmul.f32 10.0, %v347_v14  ;;  %v207_v20 = vmul.f32 10.0, %v340_v13 }
  0xf4   :  { %v206_v16 = vmul.f32 10.0, %v110_v15  ;;  %v208_v19 = vmul.f32 10.0, %v197_v17 }
  0xf5   :  { %v220_v23 = vsel %vm210_vm2, %v209_v18, -inf  ;;  %v214_v24 = vsel %vm210_vm2, %v207_v20, -inf }
  0xf6   :  { %v211_v21 = vsel %vm210_vm2, %v206_v16, -inf  ;;  %v217_v22 = vsel %vm210_vm2, %v208_v19, -inf }
  0xf7   :  { %212 = vmax.xlane.f32.xlu0 %v211_v21  ;;  %218 = vmax.xlane.f32.xlu1 %v217_v22 }
  0xfb   :  { %215 = vmax.xlane.f32.xlu0 %v214_v24  ;;  %221 = vmax.xlane.f32.xlu1 %v220_v23 }
 0x184   :  { %v213_v25 = vpop.xlane.xlu0 %212  ;;  %v484_v26 = vpop.xlane.xlu1 %218 }
 0x185   :  { %v223_v27 = vsub.f32 %v206_v16, %v213_v25  ;;  %v225_v28 = vsub.f32 %v208_v19, %v484_v26 }
 0x187   :  { %v227_v29 = vmul.f32 1.442695, %v223_v27  ;;  %v231_v30 = vmul.f32 1.442695, %v225_v28 }
 0x188   :  { %v216_v31 = vpop.xlane.xlu0 %215  ;;  %v487_v32 = vpop.xlane.xlu1 %221 }
 0x189   :  { %366 = vpow2.f32 %v227_v29  ;;  %v224_v33 = vsub.f32 %v207_v20, %v216_v31  ;;  %v226_v34 = vsub.f32 %v209_v18, %v487_v32 }
 0x18a   :  { %368 = vpow2.f32 %v231_v30 }
 0x18b   :  { %v229_v35 = vmul.f32 1.442695, %v224_v33  ;;  %v233_v36 = vmul.f32 1.442695, %v226_v34 }
 0x18d   :  { %370 = vpow2.f32 %v229_v35 }
 0x18e   :  { %372 = vpow2.f32 %v233_v36 }
 0x193   :  { %v367_v37 = vpop.eup %366 }
 0x194   :  { %v235_v38 = vsel %vm210_vm2, %v367_v37, 0.0  ;;  %v369_v39 = vpop.eup %368 }
 0x195   :  { %236 = vadd.xlane.f32.xlu0 %v235_v38  ;;  %v241_v41 = vsel %vm210_vm2, %v369_v39, 0.0 }
 0x197   :  { %v371_v40 = vpop.eup %370 }
 0x198   :  { %v238_v42 = vsel %vm210_vm2, %v371_v40, 0.0  ;;  %v373_v43 = vpop.eup %372 }
 0x199   :  { %242 = vadd.xlane.f32.xlu0 %v241_v41  ;;  %239 = vadd.xlane.f32.xlu1 %v238_v42  ;;  %v244_v46 = vsel %vm210_vm2, %v373_v43, 0.0 }
 0x19d   :  { %245 = vadd.xlane.f32.xlu1 %v244_v46  ;;  %264 = vadd.xlane.f32.xlu0 %v263_v44 }
 0x1a1   :  { %270 = vadd.xlane.f32.xlu0 %v269_v47  ;;  %267 = vadd.xlane.f32.xlu1 %v266_v48 }
 0x1a5   :  { %273 = vadd.xlane.f32.xlu1 %v272_v50 }
 0x222   :  { %v237_v51 = vpop.xlane.xlu0 %236 }
 0x223   :  { %374 = vlog2.f32 %v237_v51 }
 0x226   :  { %v240_v52 = vpop.xlane.xlu1 %239  ;;  %v243_v53 = vpop.xlane.xlu0 %242 }
 0x227   :  { %376 = vlog2.f32 %v240_v52 }
 0x228   :  { %378 = vlog2.f32 %v243_v53 }
 0x22a   :  { %v246_v54 = vpop.xlane.xlu1 %245  ;;  %v265_v55 = vpop.xlane.xlu0 %264 }
 0x22b   :  { %380 = vlog2.f32 %v246_v54  ;;  %v275_v60 = vmul.f32 10.0, %v265_v55 }
 0x22d   :  { %v375_v56 = vpop.eup %374 }
 0x22e   :  { %v248_v57 = vmul.f32 0.6931472, %v375_v56  ;;  %v268_v58 = vpop.xlane.xlu1 %267  ;;  %v271_v61 = vpop.xlane.xlu0 %270 }
 0x22f   :  { %v276_v1 = vmul.f32 10.0, %v268_v58  ;;  %v277_v3 = vmul.f32 10.0, %v271_v61 }
 0x230   :  { %v255_v59 = vadd.f32 %v248_v57, %v213_v25 }
 0x231   :  { %v377_v62 = vpop.eup %376 }
 0x232   :  { %v379_v63 = vpop.eup %378  ;;  %v250_v0 = vmul.f32 0.6931472, %v377_v62  ;;  %v274_v4 = vpop.xlane.xlu1 %273  ;;  %v279_v5 = vsub.f32 %v255_v59, %v275_v60 }
 0x233   :  { %v252_v2 = vmul.f32 0.6931472, %v379_v63  ;;  %v278_v11 = vmul.f32 10.0, %v274_v4 }
 0x234   :  { %v256_v6 = vadd.f32 %v250_v0, %v216_v31  ;;  %v284_v13 = vsel %vm283_vm3, %v279_v5, 0.0 }
 0x235   :  { %v381_v7 = vpop.eup %380  ;;  %v257_v8 = vadd.f32 %v252_v2, %v484_v26 }
 0x236   :  { %v254_v9 = vmul.f32 0.6931472, %v381_v7  ;;  %v280_v10 = vsub.f32 %v256_v6, %v276_v1 }
 0x237   :  { %v281_v12 = vsub.f32 %v257_v8, %v277_v3 }
 0x238   :  { %v285_v14 = vsel %vm283_vm3, %v280_v10, 0.0  ;;  %v258_v15 = vadd.f32 %v254_v9, %v487_v32 }
 0x239   :  { %v286_v16 = vadd.f32 %v285_v14, %v284_v13  ;;  %v287_v18 = vsel %vm283_vm3, %v281_v12, 0.0 }
 0x23a   :  { %v282_v17 = vsub.f32 %v258_v15, %v278_v11 }
 0x23b   :  { %v288_v19 = vadd.f32 %v287_v18, %v286_v16 }
 0x23c   :  { %v289_v20 = vsel %vm283_vm3, %v282_v17, 0.0 }
 0x23d   :  { %v290_v21 = vadd.f32 %v289_v20, %v288_v19 }
 0x23f   :  { %291 = vadd.xlane.f32.xlu0 %v290_v21 }
 0x2cc   :  { %v292_v22 = vpop.xlane.xlu0 %291 }
 0x2cd   :  { %v293_v23 = vrot.slane %v292_v22, 4 }
 0x2cf   :  { %v294_v24 = vadd.f32 %v293_v23, %v292_v22 }
 0x2d1   :  { %v295_v25 = vrot.slane %v294_v24, 2 }
 0x2d3   :  { %v296_v26 = vadd.f32 %v295_v25, %v294_v24 }
 0x2d5   :  { %v297_v27 = vrot.slane %v296_v26, 1 }
 0x2d7   :  { %v298_v28 = vadd.f32 %v297_v27, %v296_v26 }
 0x2d9   :  { %360 = vpush %v298_v28 }
 0x30a   :  { %s361_s21 = spop %360 }
 0x30b   :  { %v300_v29 = vstv %s361_s21 }
 0x30c   :  { %302 = vst.msk [vmem:[#allocation5] sm:$0x1] %vm301_vm4, %v300_v29 }
 0x30d   :  { %415 = shalt.err (!%p412_p12)
}
 0x30e   :  { %s416_s26 = scalar_lea.hbm %s515_s1, 16 }
 0x30f   :  { %p417_p13 = scmp.ne.s32.totalorder %s515_s1, %s416_s26  ;;  %p420_p0 = scmp.lt.u32.totalorder %s416_s26, %s515_s1 }
 0x311   :  { %p422_p1 = pnand %p420_p0, %p417_p13 }
 0x313   :  { %425 = shalt.err (!%p422_p1)
}
 0x314   :  { %312 = dma.vmem_to_hbm [thread:$0]  %s310_s20, 16, %s515_s1, [#allocation4]  }
 0x315   :  { %428 = dma.done.wait [#allocation4], 16  }
 0x316   :  { %429 = vsyncadd [#allocation4], 4294967280 }
 0x317   :  { %316 = vsyncpa [#allocation3], 1 }
 0x318   :  { %317 = vsyncpa [#allocation4], 1 }

</bundles_post_ra>
